<compile_context>
chip_gen: v7x
topology: tpu7x:2x2x1
jax: 0.10.0
libtpu: 0.0.40
codegen_flags: <defaults>
</compile_context>

<pallas_src>
import functools
import math

import jax
import jax.numpy as jnp
from jax.experimental import pallas as pl
from jax.experimental.pallas import tpu as pltpu


_VMEM_LIMIT_BYTES = 32 * 1024 * 1024   # safe scoped-VMEM limit on v5e/v6e/v7x
_ROW_STEP_BYTES = 8 * 1024 * 1024      # target x+y HBM traffic per grid step
_PAIR_TILE_BUDGET = 10 * 1024 * 1024   # per-copy VMEM budget for all-pairs tiles


# ---------------------------------------------------------------------------
# Kernels
# ---------------------------------------------------------------------------
def _cosine_rows_kernel(x_ref, y_ref, o_ref, *, inv_temp, eps):
    """Row-wise: o[r] = <x_r, y_r> / sqrt(max(||x_r||^2*||y_r||^2, eps^2)) * inv_temp."""
    x = x_ref[...].astype(jnp.float32)
    y = y_ref[...].astype(jnp.float32)
    dot = jnp.sum(x * y, axis=-1, keepdims=True)      # [TM, 1]
    nx = jnp.sum(x * x, axis=-1, keepdims=True)
    ny = jnp.sum(y * y, axis=-1, keepdims=True)
    # Matches torch CosineSimilarity: w12 / sqrt(clamp_min(w1*w2, eps^2))
    inv_norm = jax.lax.rsqrt(jnp.maximum(nx * ny, eps * eps))   # EUP rsqrt
    o_ref[...] = (dot * inv_norm * inv_temp).astype(o_ref.dtype)


def _cosine_pairs_kernel(x_ref, y_ref, o_ref, *, inv_temp, eps):
    """All-pairs block: o[i, j] = cos(x_i, y_j) * inv_temp."""
    x = x_ref[...]                                     # [TI, D]
    y = y_ref[...]                                     # [TJ, D]
    # Cross dot products x @ y^T on the MXU (f32 accumulation).
    dots = jax.lax.dot_general(
        x, y, (((1,), (1,)), ((), ())), preferred_element_type=jnp.float32)
    xf = x.astype(jnp.float32)
    yf = y.astype(jnp.float32)
    nx = jnp.sum(xf * xf, axis=-1, keepdims=True)      # [TI, 1]
    ny = jnp.sum(yf * yf, axis=-1, keepdims=True)      # [TJ, 1]
    # Outer product nx_i * ny_j as a rank-1 matmul (avoids an explicit transpose).
    n2 = jax.lax.dot_general(
        nx, ny, (((1,), (1,)), ((), ())), preferred_element_type=jnp.float32)
    inv_norm = jax.lax.rsqrt(jnp.maximum(n2, eps * eps))
    o_ref[...] = (dots * inv_norm * inv_temp).astype(o_ref.dtype)


# ---------------------------------------------------------------------------
# Tile sizing
# ---------------------------------------------------------------------------
def _pick_row_tile(n, row_bytes):
    """Rows per grid step: ~8 MiB of x+y per step; keep >=2 steps when possible."""
    tm = max(_ROW_STEP_BYTES // max(row_bytes, 1), 8)
    if n > 16:
        tm = min(tm, (n + 1) // 2)       # >= 2 grid steps so both v7x TCs get work
    tm = max((tm // 8) * 8, 8)           # sublane multiple
    return n if tm >= n else tm          # small n: single full block (always legal)


def _pick_pair_tiles(bx, by, d, x_isz, y_isz, o_isz):
    ti = bx if bx <= 256 else 256        # multiple of 8 (or the full dim)
    tj = by if by <= 256 else 256        # multiple of 128 (or the full dim)

    def fits(a, b):
        return a * d * x_isz + b * d * y_isz + a * b * o_isz <= _PAIR_TILE_BUDGET

    while not fits(ti, tj) and tj > 128 and tj != by:
        tj //= 2
    while not fits(ti, tj) and ti > 8 and ti != bx:
        ti //= 2
    return ti, tj


# ---------------------------------------------------------------------------
# pallas_call wrappers
# ---------------------------------------------------------------------------
def _similarity_rows(x2, y2, inv_temp, eps):
    n, d = x2.shape
    out_dtype = jnp.promote_types(x2.dtype, y2.dtype)
    x_isz = jnp.dtype(x2.dtype).itemsize
    y_isz = jnp.dtype(y2.dtype).itemsize
    tm = _pick_row_tile(n, d * (x_isz + y_isz))
    grid = (pl.cdiv(n, tm),)

    cost = pl.CostEstimate(
        flops=6 * n * d + 4 * n,
        transcendentals=n,
        bytes_accessed=n * d * (x_isz + y_isz) + n * jnp.dtype(out_dtype).itemsize,
    )
    kernel = functools.partial(_cosine_rows_kernel, inv_temp=inv_temp, eps=eps)
    out = pl.pallas_call(
        kernel,
        out_shape=jax.ShapeDtypeStruct((n, 1), out_dtype),
        grid=grid,
        in_specs=[
            pl.BlockSpec((tm, d), lambda i: (i, 0)),
            pl.BlockSpec((tm, d), lambda i: (i, 0)),
        ],
        # Output is <= 1/(2D) of total traffic; column shape keeps the ragged
        # (non-multiple-of-tm) last block trivially correct without any padding.
        out_specs=pl.BlockSpec((tm, 1), lambda i: (i, 0)),
        compiler_params=pltpu.CompilerParams(
            dimension_semantics=("parallel",),
            vmem_limit_bytes=_VMEM_LIMIT_BYTES,
        ),
        cost_estimate=cost,
    )(x2, y2)
    return out[:, 0]


def _similarity_all_pairs(x2, y2, inv_temp, eps):
    bx, d = x2.shape
    by, _ = y2.shape
    out_dtype = jnp.promote_types(x2.dtype, y2.dtype)
    x_isz = jnp.dtype(x2.dtype).itemsize
    y_isz = jnp.dtype(y2.dtype).itemsize
    o_isz = jnp.dtype(out_dtype).itemsize
    ti, tj = _pick_pair_tiles(bx, by, d, x_isz, y_isz, o_isz)
    gi, gj = pl.cdiv(bx, ti), pl.cdiv(by, tj)

    cost = pl.CostEstimate(
        flops=2 * bx * by * d + 2 * (bx + by) * d + 4 * bx * by,
        transcendentals=bx * by,
        bytes_accessed=gj * bx * d * x_isz + gi * by * d * y_isz + bx * by * o_isz,
    )
    kernel = functools.partial(_cosine_pairs_kernel, inv_temp=inv_temp, eps=eps)
    return pl.pallas_call(
        kernel,
        out_shape=jax.ShapeDtypeStruct((bx, by), out_dtype),
        grid=(gi, gj),
        in_specs=[
            pl.BlockSpec((ti, d), lambda i, j: (i, 0)),
            pl.BlockSpec((tj, d), lambda i, j: (j, 0)),
        ],
        out_specs=pl.BlockSpec((ti, tj), lambda i, j: (i, j)),
        compiler_params=pltpu.CompilerParams(
            dimension_semantics=("parallel", "parallel"),
            vmem_limit_bytes=_VMEM_LIMIT_BYTES,
        ),
        cost_estimate=cost,
    )(x2, y2)


@functools.partial(jax.jit, static_argnames=("temp", "eps"))
def similarity(x, y, temp, eps=1e-8):
    """CosineSimilarity(dim=-1)(x, y) / temp  — forward of the PyTorch module."""
    x = jnp.asarray(x)
    y = jnp.asarray(y)
    if x.shape[-1] != y.shape[-1]:
        raise ValueError("last (feature) dimensions must match")
    inv_temp = float(1.0 / temp)
    eps = float(eps)

    # SimCSE-style all-pairs broadcast: never materialize the O(B^2*D) broadcast
    # in HBM — read each row set once, write only the O(B^2) similarity matrix.
    if x.ndim == 3 and y.ndim == 3:
        if x.shape[1] == 1 and y.shape[0] == 1:           # (Bx,1,D) x (1,By,D)
            return _similarity_all_pairs(x[:, 0, :], y[0, :, :], inv_temp, eps)
        if x.shape[0] == 1 and y.shape[1] == 1:           # (1,Bx,D) x (By,1,D)
            return _similarity_all_pairs(y[:, 0, :], x[0, :, :], inv_temp, eps)

    # General path: rows are paired 1:1 after (usually no-op) broadcasting.
    xb, yb = jnp.broadcast_arrays(x, y)
    *lead, d = xb.shape
    n = math.prod(lead) if lead else 1
    rows = _similarity_rows(xb.reshape(n, d), yb.reshape(n, d), inv_temp, eps)
    return rows.reshape(tuple(lead))


def _reference(x, y, temp, eps=1e-8):
    x, y = jnp.broadcast_arrays(jnp.asarray(x), jnp.asarray(y))
    dot = jnp.sum(x * y, axis=-1)
    nx = jnp.sum(x * x, axis=-1)
    ny = jnp.sum(y * y, axis=-1)
    return dot / jnp.sqrt(jnp.maximum(nx * ny, eps * eps)) / temp


if __name__ == "__main__":
    key = jax.random.PRNGKey(0)
    temp = 0.05
    k1, k2, k3, k4, k5, k6 = jax.random.split(key, 6)

    # Case 1: paired rows [batch, hidden] -> [batch].
    batch, hidden = 8, 32
    x = jax.random.normal(k1, (batch, hidden), jnp.float32)
    y = jax.random.normal(k2, (batch, hidden), jnp.float32)
    out1 = jax.block_until_ready(similarity(x, y, temp))
    ref1 = _reference(x, y, temp)
    assert out1.shape == (batch,), out1.shape
    assert jnp.allclose(out1, ref1, atol=1e-4, rtol=1e-5), "mismatch (case 1)"

    # Case 2: SimCSE-style all-pairs [B,1,D] x [1,B,D] -> [B,B] (MXU path,
    # no broadcast materialization).
    b2, d2 = 4, 32
    p = jax.random.normal(k3, (b2, 1, d2), jnp.float32)
    q = jax.random.normal(k4, (1, b2, d2), jnp.float32)
    out2 = jax.block_until_ready(similarity(p, q, temp))
    ref2 = _reference(p, q, temp)
    assert out2.shape == (b2, b2), out2.shape
    assert jnp.allclose(out2, ref2, atol=1e-4, rtol=1e-5), "mismatch (case 2)"

    # Case 3: ragged row count (not a multiple of the tile) -> exercises the
    # padding-free ragged last block.
    n3, d3 = 300, 32
    a = jax.random.normal(k5, (n3, d3), jnp.float32)
    b = jax.random.normal(k6, (n3, d3), jnp.float32)
    out3 = jax.block_until_ready(similarity(a, b, temp))
    ref3 = _reference(a, b, temp)
    assert out3.shape == (n3,), out3.shape
    assert jnp.allclose(out3, ref3, atol=1e-4, rtol=1e-5), "mismatch (case 3)"

    print("KERNEL_OK")
</pallas_src>

<mosaic_0001>
module attributes {stable_mosaic.version = 11 : i64} {
  func.func @_cosine_rows_kernel(%arg0: i32, %arg1: memref<8x32xf32, #tpu.memory_space<vmem>>, %arg2: memref<8x32xf32, #tpu.memory_space<vmem>>, %arg3: memref<8x1xf32, #tpu.memory_space<vmem>>) attributes {dimension_semantics = [#tpu.dimension_semantics<parallel>], iteration_bounds = array<i64: 1>, scalar_prefetch = 0 : i64, scratch_operands = 0 : i64, tpu.core_type = #tpu.core_type<tc>, window_params = [{transform_indices = @transform_0, window_bounds = array<i64: 8, 32>}, {transform_indices = @transform_1, window_bounds = array<i64: 8, 32>}, {transform_indices = @transform_2, window_bounds = array<i64: 8, 1>}]} {
    %c0 = arith.constant 0 : index
    %c0_0 = arith.constant 0 : index
    %0 = vector.load %arg1[%c0, %c0_0] : memref<8x32xf32, #tpu.memory_space<vmem>>, vector<8x32xf32>
    %c0_1 = arith.constant 0 : index
    %c0_2 = arith.constant 0 : index
    %1 = vector.load %arg2[%c0_1, %c0_2] : memref<8x32xf32, #tpu.memory_space<vmem>>, vector<8x32xf32>
    %2 = arith.mulf %0, %1 : vector<8x32xf32>
    %cst = arith.constant dense<0.000000e+00> : vector<8xf32>
    %3 = vector.multi_reduction <add>, %2, %cst [1] : vector<8x32xf32> to vector<8xf32>
    %4 = vector.shape_cast %3 : vector<8xf32> to vector<8x1xf32>
    %5 = arith.mulf %0, %0 : vector<8x32xf32>
    %cst_3 = arith.constant dense<0.000000e+00> : vector<8xf32>
    %6 = vector.multi_reduction <add>, %5, %cst_3 [1] : vector<8x32xf32> to vector<8xf32>
    %7 = vector.shape_cast %6 : vector<8xf32> to vector<8x1xf32>
    %8 = arith.mulf %1, %1 : vector<8x32xf32>
    %cst_4 = arith.constant dense<0.000000e+00> : vector<8xf32>
    %9 = vector.multi_reduction <add>, %8, %cst_4 [1] : vector<8x32xf32> to vector<8xf32>
    %10 = vector.shape_cast %9 : vector<8xf32> to vector<8x1xf32>
    %11 = arith.mulf %7, %10 : vector<8x1xf32>
    %cst_5 = arith.constant 1.000000e-16 : f32
    %12 = vector.broadcast %cst_5 : f32 to vector<8x1xf32>
    %13 = arith.maximumf %11, %12 : vector<8x1xf32>
    %14 = math.rsqrt %13 : vector<8x1xf32>
    %15 = arith.mulf %4, %14 : vector<8x1xf32>
    %cst_6 = arith.constant 2.000000e+01 : f32
    %16 = vector.broadcast %cst_6 : f32 to vector<8x1xf32>
    %17 = arith.mulf %15, %16 : vector<8x1xf32>
    %c0_7 = arith.constant 0 : index
    %c0_8 = arith.constant 0 : index
    %18 = vector.load %arg3[%c0_7, %c0_8] : memref<8x1xf32, #tpu.memory_space<vmem>>, vector<8x1xf32>
    tpu.vector_store %arg3[%c0_7, %c0_8], %17 {strides = array<i32>} : memref<8x1xf32, #tpu.memory_space<vmem>>, vector<8x1xf32>,
    return
  }
  func.func @transform_0(%arg0: i32) -> (i32, i32) {
    %c0_i32 = arith.constant 0 : i32
    %c0_i32_0 = arith.constant 0 : i32
    return %arg0, %c0_i32 : i32, i32
  }
  func.func @transform_1(%arg0: i32) -> (i32, i32) {
    %c0_i32 = arith.constant 0 : i32
    %c0_i32_0 = arith.constant 0 : i32
    return %arg0, %c0_i32 : i32, i32
  }
  func.func @transform_2(%arg0: i32) -> (i32, i32) {
    %c0_i32 = arith.constant 0 : i32
    %c0_i32_0 = arith.constant 0 : i32
    return %arg0, %c0_i32 : i32, i32
  }
}

</mosaic_0001>

<bundles_post_ra>
// kernel: similarity.1
= control target key start
LH: loop header
LB: loop body
LE: loop exit
PB: predicated region body
PF: predicated region fallthrough
CT: control target
= control target key end

     0   :  { %7 = vsyncpa [#allocation3], 0  ;;  %s159_s0 = inlined_call_operand.hbm [shape: f32[8,32], index: 0, kind: input, shape index: {}]   ;;  %s160_s1 = inlined_call_operand.hbm [shape: f32[8,32], index: 1, kind: input, shape index: {}]   ;;  %s161_s2 = inlined_call_operand.vmem [shape: f32[8,1], index: 2, kind: output, shape index: {}]  }
   0x1   :  { %8 = vsyncpa [#allocation5], 0  ;;  %s115_s9 = smov [#allocation2]   ;;  %s116_s11 = smov [#allocation4]  }
   0x2   :  { %s15_s10 = sshll.u32 %s115_s9, 4  ;;  %s25_s12 = sshll.u32 %s116_s11, 4  ;;  %s16_s10 = int_to_ptr.vmem [resolvable:$true] %s15_s10  ;;  %s26_s12 = int_to_ptr.vmem [resolvable:$true] %s25_s12 }
   0x3   :  { %s67_s15 = scalar_lea.hbm %s159_s0, 128 }
   0x4   :  { %p68_p0 = scmp.ne.s32.totalorder %s159_s0, %s67_s15  ;;  %p71_p1 = scmp.lt.u32.totalorder %s67_s15, %s159_s0 }
   0x6   :  { %p73_p2 = pnand %p71_p1, %p68_p0 }
   0x8   :  { %76 = shalt.err (!%p73_p2)
}
   0x9   :  { %s77_s20 = scalar_lea.vmem %s16_s10, 128  ;;  %p82_p4 = scmp.lt.s32.totalorder %s16_s10, %s16_s10 }
   0xa   :  { %p78_p3 = scmp.ne.s32.totalorder %s16_s10, %s77_s20  ;;  %p83_p5 = scmp.lt.s32.totalorder %s77_s20, %s77_s20 }
   0xc   :  { %p84_p6 = por %p83_p5, %p82_p4 }
   0xe   :  { %p85_p7 = pnand %p84_p6, %p78_p3 }
  0x10   :  { %88 = shalt.err (!%p85_p7)
}
  0x11   :  { %18 = dma.hbm_to_vmem [thread:$0]  %s159_s0, 128, %s16_s10, [#allocation3]  }
  0x12   :  { %s89_s25 = scalar_lea.hbm %s160_s1, 128 }
  0x13   :  { %p90_p8 = scmp.ne.s32.totalorder %s160_s1, %s89_s25  ;;  %p93_p9 = scmp.lt.u32.totalorder %s89_s25, %s160_s1 }
  0x15   :  { %p95_p10 = pnand %p93_p9, %p90_p8 }
  0x17   :  { %98 = shalt.err (!%p95_p10)
}
  0x18   :  { %s99_s30 = scalar_lea.vmem %s26_s12, 128  ;;  %p104_p12 = scmp.lt.s32.totalorder %s26_s12, %s26_s12 }
  0x19   :  { %p100_p11 = scmp.ne.s32.totalorder %s26_s12, %s99_s30  ;;  %p105_p13 = scmp.lt.s32.totalorder %s99_s30, %s99_s30 }
  0x1b   :  { %p106_p0 = por %p105_p13, %p104_p12 }
  0x1d   :  { %p107_p1 = pnand %p106_p0, %p100_p11 }
  0x1f   :  { %110 = shalt.err (!%p107_p1)
}
  0x20   :  { %28 = dma.hbm_to_vmem [thread:$0]  %s160_s1, 128, %s26_s12, [#allocation5]  }
  0x21   :  { %111 = dma.done.wait [#allocation3], 128  }
  0x22   :  { %112 = vsyncadd [#allocation3], 4294967168 }
  0x23   :  { %113 = dma.done.wait [#allocation5], 128  }
  0x24   :  { %114 = vsyncadd [#allocation5], 4294967168  ;;  %v35_v0 = vld [vmem:[#allocation2] sm:$0xff]  ;;  %vm38_vm0 = vcmask 261120   ;;  %v36_v1 = vld [vmem:[#allocation4] sm:$0xff]  ;;  %vm55_vm1 = vcmask 7168  }
  0x25   :  { %v42_v2 = vmul.f32 %v35_v0, %v35_v0  ;;  %v46_v3 = vmul.f32 %v36_v1, %v36_v1  ;;  %v37_v4 = vmul.f32 %v36_v1, %v35_v0 }
  0x27   :  { %v43_v5 = vsel %vm38_vm0, %v42_v2, 0.0  ;;  %v39_v6 = vsel %vm38_vm0, %v37_v4, 0.0  ;;  %v47_v7 = vsel %vm38_vm0, %v46_v3, 0.0 }
  0x28   :  { %44 = vadd.xlane.f32.xlu0 %v43_v5  ;;  %40 = vadd.xlane.f32.xlu1 %v39_v6 }
  0x2c   :  { %48 = vadd.xlane.f32.xlu0 %v47_v7 }
  0xb5   :  { %v45_v8 = vpop.xlane.xlu0 %44  ;;  %v41_v12 = vpop.xlane.xlu1 %40 }
  0xb9   :  { %v49_v9 = vpop.xlane.xlu0 %48 }
  0xba   :  { %v50_v10 = vmul.f32 %v49_v9, %v45_v8 }
  0xbc   :  { %v51_v11 = vmax.f32 %v50_v10, 1e-16 }
  0xbe   :  { %65 = vrsqrt.f32 %v51_v11 }
  0xc8   :  { %v66_v13 = vpop.eup %65 }
  0xc9   :  { %v53_v14 = vmul.f32 %v66_v13, %v41_v12 }
  0xcb   :  { %v54_v15 = vmul.f32 20.0, %v53_v14 }
  0xcd   :  { %56 = vst.msk [vmem:[%s161_s2] sm:$0xff] %vm55_vm1, %v54_v15 }
  0xce   :  { %61 = vsyncpa [#allocation3], 1 }
  0xcf   :  { %62 = vsyncpa [#allocation5], 1 }

</bundles_post_ra>
